<compile_context>
chip_gen: v6e
topology: v6e:2x2x1
jax: 0.10.0
libtpu: 0.0.40
codegen_flags: <defaults>
</compile_context>

<pallas_src>
import functools

import jax
import jax.numpy as jnp
from jax.experimental import pallas as pl
from jax.experimental.pallas import tpu as pltpu


def _round_up(x, m):
    return (x + m - 1) // m * m


def _mlp_decoder_kernel(x_ref, w1_ref, b1_ref, w2_ref, b2_ref, o_ref, h_ref):
    # x_ref : (tm, D)   input row tile (bf16)
    # w1_ref: (D, H)    fc1 weight, resident across the whole grid (bf16)
    # b1_ref: (1, H)    fc1 bias (f32)
    # w2_ref: (H, tn)   fc2 weight column tile (bf16)
    # b2_ref: (1, tn)   fc2 bias tile (f32)
    # o_ref : (tm, tn)  logits tile (f32)
    # h_ref : (tm, H)   VMEM scratch caching relu(x @ W1 + b1), bf16

    # fc1 + ReLU only once per row tile (first vocab tile of this row tile).
    @pl.when(pl.program_id(1) == 0)
    def _():
        h = jnp.dot(x_ref[...], w1_ref[...], preferred_element_type=jnp.float32)
        h = jnp.maximum(h + b1_ref[...], 0.0)
        h_ref[...] = h.astype(h_ref.dtype)

    # fc2 for this vocab column tile, reusing the cached hidden activations.
    out = jnp.dot(h_ref[...], w2_ref[...], preferred_element_type=jnp.float32)
    o_ref[...] = (out + b2_ref[...]).astype(o_ref.dtype)


def mlp_decoder(x, w1, b1, w2, b2, *, tm=256, tn=512):
    """Fused fc1 -> ReLU -> fc2.

    x:  [M, D] activations
    w1: [D, H], b1: [H]    (fc1, weight stored as [in, out])
    w2: [H, V], b2: [V]    (fc2, weight stored as [in, out])
    returns logits [M, V] in float32.
    """
    M, D = x.shape
    H = w1.shape[1]
    V = w2.shape[1]

    # bf16 operands for the MXU; biases + accumulation stay f32.
    xb = x.astype(jnp.bfloat16)
    w1b = w1.astype(jnp.bfloat16)
    w2b = w2.astype(jnp.bfloat16)
    b1f = jnp.asarray(b1, jnp.float32).reshape(1, H)
    b2f = jnp.asarray(b2, jnp.float32).reshape(1, V)

    # Tile sizes: rows in multiples of 8 (sublane), vocab in multiples of 128
    # (lane).  Clip to the (padded) problem size for small inputs.
    tm = min(tm, _round_up(M, 8))
    tn = min(tn, _round_up(V, 128))
    Mp = _round_up(M, tm)
    Vp = _round_up(V, tn)

    if Mp != M:
        xb = jnp.pad(xb, ((0, Mp - M), (0, 0)))
    if Vp != V:
        w2b = jnp.pad(w2b, ((0, 0), (0, Vp - V)))
        b2f = jnp.pad(b2f, ((0, 0), (0, Vp - V)))

    grid = (Mp // tm, Vp // tn)

    # Explicit VMEM budget: double-buffered streamed operands + resident W1 +
    # hidden-activation scratch, with margin; capped at 64 MiB (v7x physical).
    vmem_bytes = (
        2 * tm * D * 2          # x row tiles (bf16)
        + 2 * D * H * 2         # w1 (bf16)
        + 2 * H * 4             # b1 (f32)
        + 2 * H * tn * 2        # w2 column tiles (bf16)
        + 2 * tn * 4            # b2 tiles (f32)
        + 2 * tm * tn * 4       # output tiles (f32)
        + tm * H * 2            # cached hidden activations (bf16 scratch)
    )
    vmem_limit = int(min(max(2 * vmem_bytes + (2 << 20), 32 << 20), 64 << 20))

    flops = 2 * Mp * D * H + 2 * Mp * H * Vp
    bytes_accessed = (
        Mp * D * 2 + D * H * 2 + H * 4          # x, w1, b1
        + (Mp // tm) * H * Vp * 2 + Vp * 4      # streamed w2 tiles, b2
        + Mp * Vp * 4                           # logits out
    )

    out = pl.pallas_call(
        _mlp_decoder_kernel,
        out_shape=jax.ShapeDtypeStruct((Mp, Vp), jnp.float32),
        grid_spec=pltpu.PrefetchScalarGridSpec(
            num_scalar_prefetch=0,
            grid=grid,
            in_specs=[
                pl.BlockSpec((tm, D), lambda i, j: (i, 0)),   # x row tile
                pl.BlockSpec((D, H), lambda i, j: (0, 0)),    # w1 (resident)
                pl.BlockSpec((1, H), lambda i, j: (0, 0)),    # b1
                pl.BlockSpec((H, tn), lambda i, j: (0, j)),   # w2 column tile
                pl.BlockSpec((1, tn), lambda i, j: (0, j)),   # b2 tile
            ],
            out_specs=pl.BlockSpec((tm, tn), lambda i, j: (i, j)),
            scratch_shapes=[pltpu.VMEM((tm, H), jnp.bfloat16)],
        ),
        compiler_params=pltpu.CompilerParams(
            dimension_semantics=("parallel", "arbitrary"),
            vmem_limit_bytes=vmem_limit,
        ),
        cost_estimate=pl.CostEstimate(
            flops=int(flops),
            transcendentals=0,
            bytes_accessed=int(bytes_accessed),
        ),
    )(xb, w1b, b1f, w2b, b2f)

    return out[:M, :V]


def _reference(x2d, w1, b1, w2, b2):
    # Pure-JAX reference mirroring the kernel's bf16-input / f32-accumulate
    # arithmetic (including the bf16 cast of the cached hidden activation).
    xb = x2d.astype(jnp.bfloat16).astype(jnp.float32)
    w1b = w1.astype(jnp.bfloat16).astype(jnp.float32)
    w2b = w2.astype(jnp.bfloat16).astype(jnp.float32)
    h = jnp.maximum(xb @ w1b + b1.reshape(1, -1), 0.0)
    h = h.astype(jnp.bfloat16).astype(jnp.float32)
    return h @ w2b + b2.reshape(1, -1)


if __name__ == "__main__":
    # Small shapes consistent with MLPDecoder(input_dim, hidden_dim, vocab_size).
    B, S = 2, 8
    input_dim, hidden_dim, vocab_size = 32, 32, 512

    key = jax.random.PRNGKey(0)
    kx, kw1, kb1, kw2, kb2 = jax.random.split(key, 5)

    x = jax.random.normal(kx, (B, S, input_dim), dtype=jnp.float32)
    w1 = jax.random.normal(kw1, (input_dim, hidden_dim), dtype=jnp.float32) * 0.05
    b1 = jax.random.normal(kb1, (hidden_dim,), dtype=jnp.float32) * 0.05
    w2 = jax.random.normal(kw2, (hidden_dim, vocab_size), dtype=jnp.float32) * 0.05
    b2 = jax.random.normal(kb2, (vocab_size,), dtype=jnp.float32) * 0.05

    # nn.Linear acts on the last dim -> flatten leading dims.
    x2d = x.reshape(B * S, input_dim)

    # Default (large-tile) configuration.
    logits = mlp_decoder(x2d, w1, b1, w2, b2)
    jax.block_until_ready(logits)
    assert logits.shape == (B * S, vocab_size)
    ref = _reference(x2d, w1, b1, w2, b2)
    assert jnp.allclose(logits, ref, atol=1e-2, rtol=1e-2)

    # Exercise the multi-tile grid, the cached-hidden-activation reuse across
    # vocab tiles, and the ragged-M padding path with small explicit tiles.
    x_ragged = x2d[: 2 * 7]                       # M = 14, not a multiple of 8
    logits_small = mlp_decoder(x_ragged, w1, b1, w2, b2, tm=8, tn=128)
    jax.block_until_ready(logits_small)
    ref_small = _reference(x_ragged, w1, b1, w2, b2)
    assert jnp.allclose(logits_small, ref_small, atol=1e-2, rtol=1e-2)

    logits = logits.reshape(B, S, vocab_size)
    jax.block_until_ready(logits)
    print("KERNEL_OK")
</pallas_src>

<mosaic_0001>
module attributes {stable_mosaic.version = 11 : i64} {
  func.func @_mlp_decoder_kernel(%arg0: i32, %arg1: i32, %arg2: memref<16x32xbf16, #tpu.memory_space<vmem>>, %arg3: memref<32x32xbf16, #tpu.memory_space<vmem>>, %arg4: memref<1x32xf32, #tpu.memory_space<vmem>>, %arg5: memref<32x512xbf16, #tpu.memory_space<vmem>>, %arg6: memref<1x512xf32, #tpu.memory_space<vmem>>, %arg7: memref<16x512xf32, #tpu.memory_space<vmem>>, %arg8: memref<16x32xbf16, #tpu.memory_space<vmem>>) attributes {dimension_semantics = [#tpu.dimension_semantics<parallel>, #tpu.dimension_semantics<arbitrary>], iteration_bounds = array<i64: 1, 1>, scalar_prefetch = 0 : i64, scratch_operands = 1 : i64, tpu.core_type = #tpu.core_type<tc>, window_params = [{transform_indices = @transform_0, window_bounds = array<i64: 16, 32>}, {pipeline_mode = #tpu.pipeline_mode<synchronous>, transform_indices = @transform_1, window_bounds = array<i64: 32, 32>}, {pipeline_mode = #tpu.pipeline_mode<synchronous>, transform_indices = @transform_2, window_bounds = array<i64: 1, 32>}, {transform_indices = @transform_3, window_bounds = array<i64: 32, 512>}, {transform_indices = @transform_4, window_bounds = array<i64: 1, 512>}, {transform_indices = @transform_5, window_bounds = array<i64: 16, 512>}]} {
    %c0_i32 = arith.constant 0 : i32
    %0 = arith.cmpi eq, %arg1, %c0_i32 : i32
    %1 = arith.extui %0 : i1 to i32
    %c0_i32_0 = arith.constant 0 : i32
    %2 = arith.cmpi ne, %1, %c0_i32_0 : i32
    scf.if %2 {
      %c0_8 = arith.constant 0 : index
      %c0_9 = arith.constant 0 : index
      %10 = vector.load %arg2[%c0_8, %c0_9] : memref<16x32xbf16, #tpu.memory_space<vmem>>, vector<16x32xbf16>
      %c0_10 = arith.constant 0 : index
      %c0_11 = arith.constant 0 : index
      %11 = vector.load %arg3[%c0_10, %c0_11] : memref<32x32xbf16, #tpu.memory_space<vmem>>, vector<32x32xbf16>
      %cst_12 = arith.constant dense<0.000000e+00> : vector<16x32xf32>
      %12 = tpu.matmul %10, %11, %cst_12 {dimension_numbers = #tpu.dot_dimension_numbers<[1], [0], [0], [1], [0, 0, 1, 1], [], []>} : vector<16x32xbf16>, vector<32x32xbf16>, vector<16x32xf32> -> vector<16x32xf32>
      %c0_13 = arith.constant 0 : index
      %c0_14 = arith.constant 0 : index
      %13 = vector.load %arg4[%c0_13, %c0_14] : memref<1x32xf32, #tpu.memory_space<vmem>>, vector<1x32xf32>
      %14 = vector.broadcast %13 : vector<1x32xf32> to vector<16x32xf32>
      %15 = arith.addf %12, %14 : vector<16x32xf32>
      %cst_15 = arith.constant 0.000000e+00 : f32
      %16 = vector.broadcast %cst_15 : f32 to vector<16x32xf32>
      %17 = arith.maximumf %15, %16 : vector<16x32xf32>
      %18 = arith.truncf %17 : vector<16x32xf32> to vector<16x32xbf16>
      %c0_16 = arith.constant 0 : index
      %c0_17 = arith.constant 0 : index
      %19 = vector.load %arg8[%c0_16, %c0_17] : memref<16x32xbf16, #tpu.memory_space<vmem>>, vector<16x32xbf16>
      tpu.vector_store %arg8[%c0_16, %c0_17], %18 {strides = array<i32>} : memref<16x32xbf16, #tpu.memory_space<vmem>>, vector<16x32xbf16>,
    } else {
    }
    %c0 = arith.constant 0 : index
    %c0_1 = arith.constant 0 : index
    %3 = vector.load %arg8[%c0, %c0_1] : memref<16x32xbf16, #tpu.memory_space<vmem>>, vector<16x32xbf16>
    %c0_2 = arith.constant 0 : index
    %c0_3 = arith.constant 0 : index
    %4 = vector.load %arg5[%c0_2, %c0_3] : memref<32x512xbf16, #tpu.memory_space<vmem>>, vector<32x512xbf16>
    %cst = arith.constant dense<0.000000e+00> : vector<16x512xf32>
    %5 = tpu.matmul %3, %4, %cst {dimension_numbers = #tpu.dot_dimension_numbers<[1], [0], [0], [1], [0, 0, 1, 1], [], []>} : vector<16x32xbf16>, vector<32x512xbf16>, vector<16x512xf32> -> vector<16x512xf32>
    %c0_4 = arith.constant 0 : index
    %c0_5 = arith.constant 0 : index
    %6 = vector.load %arg6[%c0_4, %c0_5] : memref<1x512xf32, #tpu.memory_space<vmem>>, vector<1x512xf32>
    %7 = vector.broadcast %6 : vector<1x512xf32> to vector<16x512xf32>
    %8 = arith.addf %5, %7 : vector<16x512xf32>
    %c0_6 = arith.constant 0 : index
    %c0_7 = arith.constant 0 : index
    %9 = vector.load %arg7[%c0_6, %c0_7] : memref<16x512xf32, #tpu.memory_space<vmem>>, vector<16x512xf32>
    tpu.vector_store %arg7[%c0_6, %c0_7], %8 {strides = array<i32>} : memref<16x512xf32, #tpu.memory_space<vmem>>, vector<16x512xf32>,
    return
  }
  func.func @transform_0(%arg0: i32, %arg1: i32) -> (i32, i32) {
    %c0_i32 = arith.constant 0 : i32
    %c0_i32_0 = arith.constant 0 : i32
    return %arg0, %c0_i32 : i32, i32
  }
  func.func @transform_1(%arg0: i32, %arg1: i32) -> (i32, i32) {
    %c0_i32 = arith.constant 0 : i32
    %c0_i32_0 = arith.constant 0 : i32
    %c0_i32_1 = arith.constant 0 : i32
    return %c0_i32, %c0_i32_0 : i32, i32
  }
  func.func @transform_2(%arg0: i32, %arg1: i32) -> (i32, i32) {
    %c0_i32 = arith.constant 0 : i32
    %c0_i32_0 = arith.constant 0 : i32
    %c0_i32_1 = arith.constant 0 : i32
    return %c0_i32, %c0_i32_0 : i32, i32
  }
  func.func @transform_3(%arg0: i32, %arg1: i32) -> (i32, i32) {
    %c0_i32 = arith.constant 0 : i32
    %c0_i32_0 = arith.constant 0 : i32
    return %c0_i32, %arg1 : i32, i32
  }
  func.func @transform_4(%arg0: i32, %arg1: i32) -> (i32, i32) {
    %c0_i32 = arith.constant 0 : i32
    %c0_i32_0 = arith.constant 0 : i32
    return %c0_i32, %arg1 : i32, i32
  }
  func.func @transform_5(%arg0: i32, %arg1: i32) -> (i32, i32) {
    %c0_i32 = arith.constant 0 : i32
    return %arg0, %arg1 : i32, i32
  }
}

</mosaic_0001>

<bundles_post_ra>
// kernel: tpu_custom_call.1
= control target key start
LH: loop header
LB: loop body
LE: loop exit
PB: predicated region body
PF: predicated region fallthrough
CT: control target
= control target key end

     0   :  { %10 = vsyncpa [#allocation4], 0  ;;  %s558_s0 = inlined_call_operand.hbm [shape: bf16[16,32], index: 0, kind: input, shape index: {}]   ;;  %s559_s1 = inlined_call_operand.hbm [shape: bf16[32,32], index: 1, kind: input, shape index: {}]   ;;  %s560_s2 = inlined_call_operand.vmem [shape: f32[1,32], index: 2, kind: input, shape index: {}]   ;;  %s561_s3 = inlined_call_operand.hbm [shape: bf16[32,512], index: 3, kind: input, shape index: {}]   ;;  %s562_s4 = inlined_call_operand.vmem [shape: f32[1,512], index: 4, kind: input, shape index: {}]   ;;  %s563_s5 = inlined_call_operand.hbm [shape: f32[16,512], index: 5, kind: output, shape index: {}]  }
   0x1   :  { %11 = vsyncpa [#allocation7], 0 }
   0x2   :  { %12 = vsyncpa [#allocation5], 0  ;;  %s494_s18 = smov [#allocation6]   ;;  %s495_s20 = smov [#allocation3]  }
   0x3   :  { %s30_s19 = sshll.u32 %s494_s18, 4  ;;  %s18_s21 = sshll.u32 %s495_s20, 4  ;;  %s31_s19 = int_to_ptr.vmem [resolvable:$true] %s30_s19  ;;  %s19_s21 = int_to_ptr.vmem [resolvable:$true] %s18_s21 }
   0x4   :  { %s416_s22 = scalar_lea.vmem %s31_s19, 256  ;;  %p421_p1 = scmp.lt.s32.totalorder %s31_s19, %s31_s19 }
   0x5   :  { %p417_p0 = scmp.ne.s32.totalorder %s31_s19, %s416_s22  ;;  %p422_p2 = scmp.lt.s32.totalorder %s416_s22, %s416_s22 }
   0x7   :  { %p423_p3 = por %p422_p2, %p421_p1 }
   0x9   :  { %p424_p4 = pnand %p423_p3, %p417_p0 }
   0xb   :  { %427 = shalt.err (!%p424_p4)
}
   0xc   :  { %s496_s23 = smov 64   ;;  %s497_s24 = smov 4  }
   0xd   :  { %36 = dma.hbm_to_vmem [thread:$0]  %s559_s1, 256, %s31_s19, [#allocation7], %s496_s23, %s496_s23, %s497_s24  }
   0xe   :  { %s436_s27 = scalar_lea.vmem %s19_s21, 128  ;;  %p441_p6 = scmp.lt.s32.totalorder %s19_s21, %s19_s21 }
   0xf   :  { %p437_p5 = scmp.ne.s32.totalorder %s19_s21, %s436_s27  ;;  %p442_p7 = scmp.lt.s32.totalorder %s436_s27, %s436_s27 }
  0x11   :  { %p443_p8 = por %p442_p7, %p441_p6 }
  0x13   :  { %p444_p9 = pnand %p443_p8, %p437_p5 }
  0x15   :  { %447 = shalt.err (!%p444_p9)
}
  0x16   :  { %24 = dma.hbm_to_vmem [thread:$0]  %s558_s0, 128, %s19_s21, [#allocation4], %s496_s23, %s496_s23, %s497_s24  }
  0x17   :  { %s498_s30 = smov [#allocation8]  }
  0x18   :  { %s44_s6 = sshll.u32 %s498_s30, 4  ;;  %s45_s6 = int_to_ptr.vmem [resolvable:$true] %s44_s6 }
  0x19   :  { %s456_s7 = scalar_lea.vmem %s45_s6, 1024  ;;  %p461_p11 = scmp.lt.s32.totalorder %s45_s6, %s45_s6 }
  0x1a   :  { %p457_p10 = scmp.ne.s32.totalorder %s45_s6, %s456_s7  ;;  %p462_p12 = scmp.lt.s32.totalorder %s456_s7, %s456_s7 }
  0x1c   :  { %p463_p13 = por %p462_p12, %p461_p11 }
  0x1e   :  { %p464_p0 = pnand %p463_p13, %p457_p10 }
  0x20   :  { %467 = shalt.err (!%p464_p0)
}
  0x21   :  { %s499_s1 = smov 256   ;;  %s500_s8 = smov 16  }
  0x22   :  { %50 = dma.hbm_to_vmem [thread:$0]  %s561_s3, 1024, %s45_s6, [#allocation7], %s499_s1, %s499_s1, %s500_s8  }
  0x23   :  { %488 = dma.done.wait [#allocation4], 128  }
  0x24   :  { %489 = vsyncadd [#allocation4], 4294967168 }
  0x25   :  { %490 = dma.done.wait [#allocation7], 1280  }
  0x26   :  { %491 = vsyncadd [#allocation7], 4294966016  ;;  %v501_v0 = vmov 0.0   ;;  %vm502_vm0 = vmmov 0   ;;  %v392_v1 = vld [vmem:[#allocation6 + $0x8] sm:$0xff]   ;;  %v393_v2 = vld [vmem:[#allocation6] sm:$0xff]   ;;  %v167_v25 = vlaneseq }
  0x27   :  { %371 = vmatprep.subr.bf16.mxu0 %v501_v0  ;;  %375 = vmatprep.mubr.msk.bf16.mxu0 %vm502_vm0, %v501_v0  ;;  %v394_v3 = vld [vmem:[#allocation3] sm:$0xff]   ;;  %vm97_vm1 = vcmask 261120   ;;  %v398_v5 = vld [vmem:[#allocation8 + $0x24] ss:$16 sps:$4 sm:$0xff]   ;;  %v400_v7 = vld [vmem:[#allocation8 + $0x20] ss:$16 sps:$4 sm:$0xff]  }
  0x28   :  { %372 = vmatpush3.bf16.msra.mxu0 %v392_v1  ;;  %v397_v4 = vld [vmem:[#allocation8 + $0x2c] ss:$16 sps:$4 sm:$0xff]   ;;  %v395_v6 = vld [vmem:[#allocation8 + $0x28] ss:$16 sps:$4 sm:$0xff]   ;;  %248 = vmatprep.subr.bf16.mxu1 %v398_v5  ;;  %v404_v9 = vld [vmem:[#allocation8 + $0x4] ss:$16 sps:$4 sm:$0xff]  }
  0x29   :  { %373 = vmatprep.subr.bf16.mxu0 %v501_v0  ;;  %v403_v8 = vld [vmem:[#allocation8 + $0xc] ss:$16 sps:$4 sm:$0xff]   ;;  %249 = vmatpush1.bf16.msra.mxu1 %v400_v7  ;;  %v401_v10 = vld [vmem:[#allocation8 + $0x8] ss:$16 sps:$4 sm:$0xff]   ;;  %v406_v11 = vld [vmem:[#allocation8] ss:$16 sps:$4 sm:$0xff]  }
  0x2a   :  { %250 = vmatprep.subr.bf16.mxu1 %v404_v9  ;;  %v503_v12 = vmov 0   ;;  %v348_v13 = vld [vmem:[%s560_s2] ss:$0 sm:$0xff]  ;;  %vm152_vm2 = vcmask 257024   ;;  %v168_v26 = vshrl.u32 %v167_v25, 7  ;;  %s504_s12 = smov [#allocation9]  }
  0x2b   :  { %268 = vmatprep.mubr.bf16.mxu1 %v503_v12  ;;  %v165_v29 = vld [vmem:[%s562_s4] sm:$0xf]  ;;  %s335_s13 = sshll.u32 %s504_s12, 4  ;;  %s336_s13 = int_to_ptr.vmem [resolvable:$true] %s335_s13 }
  0x2c   :  { %374 = vmatpush3.bf16.msra.mxu0 %v393_v2  ;;  %v169_v27 = vsub.s32 0, %v168_v26  ;;  %v177_v28 = vsub.s32 2, %v168_v26  ;;  %v173_v30 = vsub.s32 1, %v168_v26  ;;  %v181_v31 = vsub.s32 3, %v168_v26  ;;  %s468_s4 = scalar_lea.vmem %s336_s13, 1024  ;;  %p473_p2 = scmp.lt.s32.totalorder %s336_s13, %s336_s13 }
  0x2d   :  { %291 = vmatprep.subr.bf16.mxu0 %v397_v4  ;;  %251 = vmatpush1.bf16.msra.mxu1 %v406_v11  ;;  %p469_p1 = scmp.ne.s32.totalorder %s336_s13, %s468_s4  ;;  %p474_p3 = scmp.lt.s32.totalorder %s468_s4, %s468_s4 }
  0x2e   :  { %v170_v32 = vrot.slane %v165_v29, %v169_v27  ;;  %v178_v33 = vrot.slane %v165_v29, %v177_v28  ;;  %v174_v34 = vrot.slane %v165_v29, %v173_v30  ;;  %v182_v35 = vrot.slane %v165_v29, %v181_v31 }
  0x2f   :  { %376 = vmatmul.mubr.msk.bf16.vlgmr.msra.gmra.mxu0 %vm97_vm1, %v394_v3  ;;  %p475_p4 = por %p474_p3, %p473_p2 }
  0x30   :  { %292 = vmatpush1.bf16.msra.mxu0 %v395_v6  ;;  %311 = vmatprep.mubr.bf16.mxu0 %v503_v12 }
  0x31   :  { %293 = vmatprep.subr.bf16.mxu0 %v403_v8  ;;  %p476_p5 = pnand %p475_p4, %p469_p1 }
  0x34   :  { %294 = vmatpush1.bf16.msra.mxu0 %v401_v10 }
  0xef   :  { %v135_v14 = vpop.f32.mrf.mxu0 }
  0xf0   :  { %v136_v15 = vadd.f32 %v348_v13, %v135_v14 }
  0xf1   :  { %v377_v16 = vpop.f32.mrf.mxu0 }
  0xf2   :  { %v142_v17 = vmax.f32 %v136_v15, 0.0 }
  0xf3   :  { %v138_v18 = vpop.f32.mrf.mxu0 }
  0xf4   :  { %v366_v19 = vpack.c.bf16 %v142_v17, %v142_v17  ;;  %v139_v20 = vadd.f32 %v348_v13, %v138_v18 }
  0xf5   :  { %v378_v21 = vpop.f32.mrf.mxu0 }
  0xf6   :  { %153 = vst.msk [vmem:[#allocation2] sm:$0xf] %vm152_vm2, %v366_v19  ;;  %v143_v22 = vmax.f32 %v139_v20, 0.0 }
  0xf8   :  { %v367_v23 = vpack.c.bf16 %v143_v22, %v143_v22 }
  0xfa   :  { %154 = vst.msk [vmem:[#allocation2 + $0x4] sm:$0xf] %vm152_vm2, %v367_v23 }
 0x101   :  { %v407_v24 = vld [vmem:[#allocation2] sm:$0xff]  }
 0x102   :  { %364 = vmatmul.mubr.msk.bf16.vlgmr.msra.gmra.mxu1 %vm97_vm1, %v407_v24  ;;  %365 = vmatmul.mubr.msk.bf16.vlgmr.msra.gmra.mxu0 %vm97_vm1, %v407_v24 }
 0x1c2   :  { %v270_v36 = vpop.f32.mrf.mxu1  ;;  %v313_v37 = vpop.f32.mrf.mxu0 }
 0x1c3   :  { %v271_v38 = vadd.f32 %v270_v36, %v170_v32  ;;  %v314_v39 = vadd.f32 %v313_v37, %v178_v33 }
 0x1c4   :  { %v272_v40 = vpop.f32.mrf.mxu1  ;;  %v315_v41 = vpop.f32.mrf.mxu0 }
 0x1c5   :  { %322 = vst [vmem:[#allocation9] sm:$0xff] %v271_v38  ;;  %324 = vst [vmem:[#allocation9 + $0x10] sm:$0xff] %v314_v39  ;;  %v273_v42 = vadd.f32 %v272_v40, %v174_v34  ;;  %v316_v43 = vadd.f32 %v315_v41, %v182_v35 }
 0x1c6   :  { %v274_v44 = vpop.f32.mrf.mxu1  ;;  %v317_v45 = vpop.f32.mrf.mxu0 }
 0x1c7   :  { %323 = vst [vmem:[#allocation9 + $0x8] sm:$0xff] %v273_v42  ;;  %325 = vst [vmem:[#allocation9 + $0x18] sm:$0xff] %v316_v43  ;;  %v275_v46 = vadd.f32 %v274_v44, %v170_v32  ;;  %v318_v47 = vadd.f32 %v317_v45, %v178_v33 }
 0x1c8   :  { %v276_v48 = vpop.f32.mrf.mxu1  ;;  %v319_v49 = vpop.f32.mrf.mxu0 }
 0x1c9   :  { %326 = vst [vmem:[#allocation9 + $0x20] sm:$0xff] %v275_v46  ;;  %328 = vst [vmem:[#allocation9 + $0x30] sm:$0xff] %v318_v47  ;;  %v277_v50 = vadd.f32 %v276_v48, %v174_v34  ;;  %v320_v51 = vadd.f32 %v319_v49, %v182_v35 }
 0x1cb   :  { %327 = vst [vmem:[#allocation9 + $0x28] sm:$0xff] %v277_v50  ;;  %329 = vst [vmem:[#allocation9 + $0x38] sm:$0xff] %v320_v51 }
 0x1cc   :  { %479 = shalt.err (!%p476_p5)
}
 0x1cd   :  { %s505_s14 = smov 512   ;;  %s506_s15 = smov 32  }
 0x1ce   :  { %341 = dma.vmem_to_hbm [thread:$0]  %s336_s13, 1024, %s563_s5, [#allocation5], %s505_s14, %s505_s14, %s506_s15  }
 0x1cf   :  { %492 = dma.done.wait [#allocation5], 1024  }
 0x1d0   :  { %493 = vsyncadd [#allocation5], 4294966272 }
 0x1d1   :  { %345 = vsyncpa [#allocation4], 1 }
 0x1d2   :  { %346 = vsyncpa [#allocation7], 1 }
 0x1d3   :  { %347 = vsyncpa [#allocation5], 1 }

</bundles_post_ra>
